<compile_context>
chip_gen: v7x
topology: tpu7x:2x2x1
jax: 0.10.0
libtpu: 0.0.40
codegen_flags: <defaults>
</compile_context>

<pallas_src>
import jax
import jax.numpy as jnp
from jax import lax
from jax.experimental import pallas as pl
from jax.experimental.pallas import tpu as pltpu


def _round_up(x: int, m: int) -> int:
    return ((x + m - 1) // m) * m


def _coupling_update(x, ld, m, w1, tyb, w2, b2, Dp, reverse):
    """One affine coupling layer on padded [TB, Dp] f32 coords."""
    um = 1.0 - m
    xm = x * m                                           # conditioning input
    # Conditioner MLP: MXU dots in bf16 with f32 accumulation; atom-type term is
    # pre-hoisted into tyb (XLA side).
    h = jnp.maximum(
        jnp.dot(xm.astype(jnp.bfloat16), w1, preferred_element_type=jnp.float32)
        + tyb.astype(jnp.float32),
        0.0)                                             # [TB, Hp] f32
    # Single fused dot for (scale || shift); both slices below are lane-aligned.
    st = jnp.dot(h.astype(jnp.bfloat16), w2,
                 preferred_element_type=jnp.float32) + b2  # [TB, 2*Dp]
    s = st[:, :Dp] * um
    t = st[:, Dp:] * um
    # s == t == 0 on frozen and padded dims -> affine update is identity there.
    # TODO(synk): production coupling flows usually bound s (e.g. tanh) before exp().
    if reverse:
        x_new = (x - t) * jnp.exp(-s)
        ld_new = ld - jnp.sum(s, axis=-1, keepdims=True)
    else:
        x_new = x * jnp.exp(s) + t
        ld_new = ld + jnp.sum(s, axis=-1, keepdims=True)
    return x_new, ld_new


def make_chain_kernel(reverse: bool, num_layers: int, Dp: int):
    """Whole chain in one grid step: layer loop in-kernel, carries stay in vregs."""
    unroll = min(num_layers, 4)   # cap unroll to bound vreg pressure / code bloat

    def kernel(x_ref, w1_ref, tyb_ref, w2_ref, b2_ref, m_ref, y_ref, ld_ref):
        x0 = x_ref[...]                                   # [Bp, Dp] f32
        ld0 = jnp.zeros(ld_ref.shape, jnp.float32)        # [Bp, 1]

        def body(l, carry):
            x, ld = carry
            return _coupling_update(x, ld, m_ref[l], w1_ref[l], tyb_ref[l],
                                    w2_ref[l], b2_ref[l], Dp, reverse)

        x_fin, ld_fin = lax.fori_loop(0, num_layers, body, (x0, ld0), unroll=unroll)
        y_ref[...] = x_fin
        ld_ref[...] = ld_fin

    return kernel


def make_layer_kernel(reverse: bool, Dp: int):
    """One layer per grid step; outputs double as resident accumulators across the
    innermost ('arbitrary') layer axis. Caps VMEM at ~2 layers of weights and lets the
    auto-pipeline overlap layer l+1 weight DMA with layer l compute."""

    def kernel(x_ref, w1_ref, tyb_ref, w2_ref, b2_ref, m_ref, y_ref, ld_ref):
        l = pl.program_id(1)

        @pl.when(l == 0)
        def _():
            y_ref[...] = x_ref[...]
            ld_ref[...] = jnp.zeros(ld_ref.shape, jnp.float32)

        x_new, ld_new = _coupling_update(
            y_ref[...], ld_ref[...], m_ref[0], w1_ref[0], tyb_ref[0],
            w2_ref[0], b2_ref[0], Dp, reverse)
        y_ref[...] = x_new
        ld_ref[...] = ld_new

    return kernel


def _vmem_limit_bytes(needed_bytes: int) -> int:
    """Footprint-derived VMEM request, capped at 75% of physical VMEM (v7x-safe)."""
    try:
        cap = int(pltpu.get_tpu_info().vmem_capacity_bytes)
    except Exception:
        cap = 64 * 1024 * 1024    # conservative: v7x per-TC physical VMEM
    return int(max(16 << 20, min(2 * needed_bytes + (4 << 20), (3 * cap) // 4)))


def sequential_flow(coords, atom_types, adj_list, params, reverse: bool = False,
                    force_layer_grid: bool = False):
    """Pallas implementation of SequentialFlow.forward.

    coords:     [B, N, 3] float32
    atom_types: [B, N]    int32
    adj_list:   [E, 2]    int32 (unused by the synthetic coupling layer)
    returns (new_coords [B, N, 3], log_det [B])
    """
    del adj_list  # TODO(synk): adj_list graph message passing not consumed here
    B, N, three = coords.shape
    assert three == 3
    D = N * 3
    T = params["num_types"]

    W1, b1, Wt, W2, b2, mask = (params[k] for k in ("W1", "b1", "Wt", "W2", "b2", "mask"))
    L, _, H = W1.shape

    # Lane/sublane-aligned padded sizes.  TB is the per-step batch tile: up to 256
    # rows so one step fills the v6e/v7x MXU M dimension (128 native on v5e).
    TB = min(256, _round_up(B, 8))
    Bp = _round_up(B, TB)
    Dp = _round_up(D, 128)
    Hp = _round_up(H, 128)
    n_btiles = Bp // TB
    # NOTE: at small D/H the 128-lane padding inflates the streamed weight bytes; for
    # production use, batch many molecules per call so the padded stream is amortized.

    # ---- XLA-side prep (cheap, once per call) ------------------------------
    x = coords.reshape(B, D).astype(jnp.float32)
    xp = jnp.zeros((Bp, Dp), jnp.float32).at[:B, :D].set(x)

    ty_oh = jax.nn.one_hot(atom_types, T, dtype=jnp.float32).reshape(B, N * T)
    # Hoist the atom-type conditioning: tyb[l] = ty_oh @ Wt[l] + b1[l].
    tyb = jnp.einsum("bf,lfh->lbh", ty_oh, Wt,
                     precision=lax.Precision.HIGHEST) + b1             # [L, B, H]
    tybp = jnp.zeros((L, Bp, Hp), jnp.bfloat16).at[:, :B, :H].set(
        tyb.astype(jnp.bfloat16))

    # bf16 weights for the MXU (f32 accumulation in-kernel).
    W1p = jnp.zeros((L, Dp, Hp), jnp.bfloat16).at[:, :D, :H].set(W1.astype(jnp.bfloat16))
    # Fused (scale || shift) second-layer weight: each half padded to Dp lanes.
    W2f = jnp.zeros((L, Hp, 2 * Dp), jnp.bfloat16)
    W2f = W2f.at[:, :H, :D].set(W2[:, :, :D].astype(jnp.bfloat16))
    W2f = W2f.at[:, :H, Dp:Dp + D].set(W2[:, :, D:].astype(jnp.bfloat16))
    b2f = jnp.zeros((L, 1, 2 * Dp), jnp.float32)
    b2f = b2f.at[:, :, :D].set(b2[:, :, :D])
    b2f = b2f.at[:, :, Dp:Dp + D].set(b2[:, :, D:])
    # Pad lanes of the mask are frozen (m=1) so s = t = 0 there (log-det safe).
    maskp = jnp.ones((L, 1, Dp), jnp.float32).at[:, :, :D].set(mask)

    # Reverse mode walks the layer stack backwards (reversed(self.layers)).
    if reverse:
        flip = lambda a: jnp.flip(a, axis=0)
        W1p, tybp, W2f, b2f, maskp = map(flip, (W1p, tybp, W2f, b2f, maskp))

    # ---- footprint accounting & path selection -----------------------------
    per_layer_bytes = (Dp * Hp * 2          # W1 (bf16)
                       + Hp * 2 * Dp * 2    # fused W2 (bf16)
                       + TB * Hp * 2        # tyb tile (bf16)
                       + 2 * Dp * 4         # b2
                       + Dp * 4)            # mask
    chain_in_bytes = (Bp * Dp * 4
                      + L * (Dp * Hp * 2 + Hp * 2 * Dp * 2 + Bp * Hp * 2
                             + 2 * Dp * 4 + Dp * 4))
    chain_out_bytes = Bp * Dp * 4 + Bp * 4
    use_chain = ((not force_layer_grid) and n_btiles == 1
                 and 2 * (chain_in_bytes + chain_out_bytes) < 20 * 1024 * 1024)

    if use_chain:
        # Whole chain in one grid step; footprint is small enough that the auto
        # double-buffering of the weight slab is harmless on every generation.
        needed = 2 * (chain_in_bytes + chain_out_bytes)
        kernel = make_chain_kernel(reverse, L, Dp)
        grid_spec = pltpu.PrefetchScalarGridSpec(
            num_scalar_prefetch=0,
            grid=(1,),
            in_specs=[
                pl.BlockSpec((Bp, Dp), lambda i: (0, 0)),            # coords (padded)
                pl.BlockSpec((L, Dp, Hp), lambda i: (0, 0, 0)),      # W1 (bf16)
                pl.BlockSpec((L, Bp, Hp), lambda i: (0, 0, 0)),      # hoisted type bias (bf16)
                pl.BlockSpec((L, Hp, 2 * Dp), lambda i: (0, 0, 0)),  # fused W2 (bf16)
                pl.BlockSpec((L, 1, 2 * Dp), lambda i: (0, 0, 0)),   # fused b2
                pl.BlockSpec((L, 1, Dp), lambda i: (0, 0, 0)),       # frozen mask
            ],
            out_specs=[
                pl.BlockSpec((Bp, Dp), lambda i: (0, 0)),            # coords out
                pl.BlockSpec((Bp, 1), lambda i: (0, 0)),             # log_det out
            ],
        )
        dim_sem = ("arbitrary",)
    else:
        # Production path: layer loop on the grid, batch tiles parallel across cores.
        needed = 2 * (TB * Dp * 4 + per_layer_bytes + TB * Dp * 4 + TB * 4)
        kernel = make_layer_kernel(reverse, Dp)
        grid_spec = pltpu.PrefetchScalarGridSpec(
            num_scalar_prefetch=0,
            grid=(n_btiles, L),
            in_specs=[
                pl.BlockSpec((TB, Dp), lambda b, l: (b, 0)),             # coords tile
                pl.BlockSpec((1, Dp, Hp), lambda b, l: (l, 0, 0)),       # W1[l]
                pl.BlockSpec((1, TB, Hp), lambda b, l: (l, b, 0)),       # tyb[l, b-tile]
                pl.BlockSpec((1, Hp, 2 * Dp), lambda b, l: (l, 0, 0)),   # fused W2[l]
                pl.BlockSpec((1, 1, 2 * Dp), lambda b, l: (l, 0, 0)),    # fused b2[l]
                pl.BlockSpec((1, 1, Dp), lambda b, l: (l, 0, 0)),        # mask[l]
            ],
            out_specs=[
                pl.BlockSpec((TB, Dp), lambda b, l: (b, 0)),             # coords out (accumulator)
                pl.BlockSpec((TB, 1), lambda b, l: (b, 0)),              # log_det out (accumulator)
            ],
        )
        dim_sem = ("parallel", "arbitrary")   # batch across TCs; layer axis carries state

    y, ld = pl.pallas_call(
        kernel,
        out_shape=(
            jax.ShapeDtypeStruct((Bp, Dp), jnp.float32),
            jax.ShapeDtypeStruct((Bp, 1), jnp.float32),
        ),
        grid_spec=grid_spec,
        compiler_params=pltpu.CompilerParams(
            dimension_semantics=dim_sem,
            vmem_limit_bytes=_vmem_limit_bytes(needed),
        ),
    )(xp, W1p, tybp, W2f, b2f, maskp)

    return y[:B, :D].reshape(B, N, 3), ld[:B, 0]


def init_params(key, L, N, H, T):
    """Deterministic synthetic parameters for L coupling layers."""
    D = N * 3
    k1, k2, k3 = jax.random.split(key, 3)
    scale = 0.1
    W1 = scale * jax.random.normal(k1, (L, D, H), jnp.float32)
    b1 = jnp.zeros((L, 1, H), jnp.float32)
    Wt = scale * jax.random.normal(k2, (L, N * T, H), jnp.float32)
    W2 = scale * jax.random.normal(k3, (L, H, 2 * D), jnp.float32)
    b2 = jnp.zeros((L, 1, 2 * D), jnp.float32)

    # Alternating even/odd atom masks per layer (1 = frozen dim).
    atom_idx = jnp.arange(N)
    masks = []
    for l in range(L):
        m_atom = ((atom_idx + l) % 2 == 0).astype(jnp.float32)   # [N]
        masks.append(jnp.repeat(m_atom, 3))                      # [D]
    mask = jnp.stack(masks)[:, None, :]                          # [L, 1, D]

    return dict(W1=W1, b1=b1, Wt=Wt, W2=W2, b2=b2, mask=mask, num_types=T)


if __name__ == "__main__":
    key = jax.random.PRNGKey(0)
    B, N, T, H, L = 2, 8, 4, 32, 3

    kc, kt, kp = jax.random.split(key, 3)
    coords = jax.random.normal(kc, (B, N, 3), jnp.float32)
    atom_types = jax.random.randint(kt, (B, N), 0, T)
    adj_list = jnp.stack([jnp.arange(N - 1), jnp.arange(1, N)], axis=-1).astype(jnp.int32)

    params = init_params(kp, L, N, H, T)

    # --- collapsed-chain path (default at these small shapes) ---------------
    y, ld_fwd = sequential_flow(coords, atom_types, adj_list, params, reverse=False)
    x_rec, ld_rev = sequential_flow(y, atom_types, adj_list, params, reverse=True)
    jax.block_until_ready((y, ld_fwd, x_rec, ld_rev))

    assert jnp.allclose(x_rec, coords, atol=1e-4), "inverse reconstruction failed (chain)"
    assert jnp.allclose(ld_fwd + ld_rev, 0.0, atol=1e-4), "log-det cancellation failed (chain)"
    assert ld_fwd.shape == (B,)

    # --- layer-grid path (production path for large L / D / H / B) ----------
    y_g, ld_g = sequential_flow(coords, atom_types, adj_list, params,
                                reverse=False, force_layer_grid=True)
    x_rec_g, ld_rev_g = sequential_flow(y_g, atom_types, adj_list, params,
                                        reverse=True, force_layer_grid=True)
    jax.block_until_ready((y_g, ld_g, x_rec_g, ld_rev_g))

    assert jnp.allclose(y_g, y, atol=1e-5), "layer-grid path mismatch (coords)"
    assert jnp.allclose(ld_g, ld_fwd, atol=1e-5), "layer-grid path mismatch (log_det)"
    assert jnp.allclose(x_rec_g, coords, atol=1e-4), "inverse reconstruction failed (grid)"
    assert jnp.allclose(ld_g + ld_rev_g, 0.0, atol=1e-4), "log-det cancellation failed (grid)"

    print("KERNEL_OK")
</pallas_src>

<mosaic_0001>
module attributes {stable_mosaic.version = 11 : i64} {
  func.func @kernel(%arg0: i32, %arg1: memref<8x128xf32, #tpu.memory_space<vmem>>, %arg2: memref<3x128x128xbf16, #tpu.memory_space<vmem>>, %arg3: memref<3x8x128xbf16, #tpu.memory_space<vmem>>, %arg4: memref<3x128x256xbf16, #tpu.memory_space<vmem>>, %arg5: memref<3x1x256xf32, #tpu.memory_space<vmem>>, %arg6: memref<3x1x128xf32, #tpu.memory_space<vmem>>, %arg7: memref<8x128xf32, #tpu.memory_space<vmem>>, %arg8: memref<8x1xf32, #tpu.memory_space<vmem>>) attributes {dimension_semantics = [#tpu.dimension_semantics<arbitrary>], iteration_bounds = array<i64: 1>, scalar_prefetch = 0 : i64, scratch_operands = 0 : i64, tpu.core_type = #tpu.core_type<tc>, window_params = [{pipeline_mode = #tpu.pipeline_mode<synchronous>, transform_indices = @transform_0, window_bounds = array<i64: 8, 128>}, {pipeline_mode = #tpu.pipeline_mode<synchronous>, transform_indices = @transform_1, window_bounds = array<i64: 3, 128, 128>}, {pipeline_mode = #tpu.pipeline_mode<synchronous>, transform_indices = @transform_2, window_bounds = array<i64: 3, 8, 128>}, {pipeline_mode = #tpu.pipeline_mode<synchronous>, transform_indices = @transform_3, window_bounds = array<i64: 3, 128, 256>}, {pipeline_mode = #tpu.pipeline_mode<synchronous>, transform_indices = @transform_4, window_bounds = array<i64: 3, 1, 256>}, {pipeline_mode = #tpu.pipeline_mode<synchronous>, transform_indices = @transform_5, window_bounds = array<i64: 3, 1, 128>}, {pipeline_mode = #tpu.pipeline_mode<synchronous>, transform_indices = @transform_6, window_bounds = array<i64: 8, 128>}, {pipeline_mode = #tpu.pipeline_mode<synchronous>, transform_indices = @transform_7, window_bounds = array<i64: 8, 1>}]} {
    %c0 = arith.constant 0 : index
    %c0_0 = arith.constant 0 : index
    %0 = vector.load %arg1[%c0, %c0_0] : memref<8x128xf32, #tpu.memory_space<vmem>>, vector<8x128xf32>
    %cst = arith.constant 0.000000e+00 : f32
    %1 = vector.broadcast %cst : f32 to vector<8x1xf32>
    %c0_i32 = arith.constant 0 : i32
    %2 = arith.index_cast %c0_i32 : i32 to index
    %c0_1 = arith.constant 0 : index
    %c0_2 = arith.constant 0 : index
    %3 = vector.load %arg6[%2, %c0_1, %c0_2] : memref<3x1x128xf32, #tpu.memory_space<vmem>>, vector<1x1x128xf32>
    %4 = vector.shape_cast %3 : vector<1x1x128xf32> to vector<1x128xf32>
    %5 = arith.index_cast %c0_i32 : i32 to index
    %c0_3 = arith.constant 0 : index
    %c0_4 = arith.constant 0 : index
    %6 = vector.load %arg2[%5, %c0_3, %c0_4] : memref<3x128x128xbf16, #tpu.memory_space<vmem>>, vector<1x128x128xbf16>
    %7 = vector.shape_cast %6 : vector<1x128x128xbf16> to vector<128x128xbf16>
    %8 = arith.index_cast %c0_i32 : i32 to index
    %c0_5 = arith.constant 0 : index
    %c0_6 = arith.constant 0 : index
    %9 = vector.load %arg3[%8, %c0_5, %c0_6] : memref<3x8x128xbf16, #tpu.memory_space<vmem>>, vector<1x8x128xbf16>
    %10 = vector.shape_cast %9 : vector<1x8x128xbf16> to vector<8x128xbf16>
    %11 = arith.index_cast %c0_i32 : i32 to index
    %c0_7 = arith.constant 0 : index
    %c0_8 = arith.constant 0 : index
    %12 = vector.load %arg4[%11, %c0_7, %c0_8] : memref<3x128x256xbf16, #tpu.memory_space<vmem>>, vector<1x128x256xbf16>
    %13 = vector.shape_cast %12 : vector<1x128x256xbf16> to vector<128x256xbf16>
    %14 = arith.index_cast %c0_i32 : i32 to index
    %c0_9 = arith.constant 0 : index
    %c0_10 = arith.constant 0 : index
    %15 = vector.load %arg5[%14, %c0_9, %c0_10] : memref<3x1x256xf32, #tpu.memory_space<vmem>>, vector<1x1x256xf32>
    %16 = vector.shape_cast %15 : vector<1x1x256xf32> to vector<1x256xf32>
    %cst_11 = arith.constant 1.000000e+00 : f32
    %17 = vector.broadcast %cst_11 : f32 to vector<1x128xf32>
    %18 = arith.subf %17, %4 : vector<1x128xf32>
    %19 = vector.broadcast %4 : vector<1x128xf32> to vector<8x128xf32>
    %20 = arith.mulf %0, %19 : vector<8x128xf32>
    %21 = arith.truncf %20 : vector<8x128xf32> to vector<8x128xbf16>
    %cst_12 = arith.constant dense<0.000000e+00> : vector<8x128xf32>
    %22 = tpu.matmul %21, %7, %cst_12 {dimension_numbers = #tpu.dot_dimension_numbers<[1], [0], [0], [1], [0, 0, 1, 1], [], []>} : vector<8x128xbf16>, vector<128x128xbf16>, vector<8x128xf32> -> vector<8x128xf32>
    %23 = arith.extf %10 : vector<8x128xbf16> to vector<8x128xf32>
    %24 = arith.addf %22, %23 : vector<8x128xf32>
    %cst_13 = arith.constant 0.000000e+00 : f32
    %25 = vector.broadcast %cst_13 : f32 to vector<8x128xf32>
    %26 = arith.maximumf %24, %25 : vector<8x128xf32>
    %27 = arith.truncf %26 : vector<8x128xf32> to vector<8x128xbf16>
    %cst_14 = arith.constant dense<0.000000e+00> : vector<8x256xf32>
    %28 = tpu.matmul %27, %13, %cst_14 {dimension_numbers = #tpu.dot_dimension_numbers<[1], [0], [0], [1], [0, 0, 1, 1], [], []>} : vector<8x128xbf16>, vector<128x256xbf16>, vector<8x256xf32> -> vector<8x256xf32>
    %29 = vector.broadcast %16 : vector<1x256xf32> to vector<8x256xf32>
    %30 = arith.addf %28, %29 : vector<8x256xf32>
    %31 = vector.extract_strided_slice %30 {offsets = [0, 0], sizes = [8, 128], strides = [1, 1]} : vector<8x256xf32> to vector<8x128xf32>
    %32 = vector.broadcast %18 : vector<1x128xf32> to vector<8x128xf32>
    %33 = arith.mulf %31, %32 : vector<8x128xf32>
    %34 = vector.extract_strided_slice %30 {offsets = [0, 128], sizes = [8, 128], strides = [1, 1]} : vector<8x256xf32> to vector<8x128xf32>
    %35 = vector.broadcast %18 : vector<1x128xf32> to vector<8x128xf32>
    %36 = arith.mulf %34, %35 : vector<8x128xf32>
    %37 = math.exp %33 : vector<8x128xf32>
    %38 = arith.mulf %0, %37 : vector<8x128xf32>
    %39 = arith.addf %38, %36 : vector<8x128xf32>
    %cst_15 = arith.constant dense<0.000000e+00> : vector<8xf32>
    %40 = vector.multi_reduction <add>, %33, %cst_15 [1] : vector<8x128xf32> to vector<8xf32>
    %41 = vector.shape_cast %40 : vector<8xf32> to vector<8x1xf32>
    %42 = arith.addf %1, %41 : vector<8x1xf32>
    %c1_i32 = arith.constant 1 : i32
    %43 = arith.index_cast %c1_i32 : i32 to index
    %c0_16 = arith.constant 0 : index
    %c0_17 = arith.constant 0 : index
    %44 = vector.load %arg6[%43, %c0_16, %c0_17] : memref<3x1x128xf32, #tpu.memory_space<vmem>>, vector<1x1x128xf32>
    %45 = vector.shape_cast %44 : vector<1x1x128xf32> to vector<1x128xf32>
    %46 = arith.index_cast %c1_i32 : i32 to index
    %c0_18 = arith.constant 0 : index
    %c0_19 = arith.constant 0 : index
    %47 = vector.load %arg2[%46, %c0_18, %c0_19] : memref<3x128x128xbf16, #tpu.memory_space<vmem>>, vector<1x128x128xbf16>
    %48 = vector.shape_cast %47 : vector<1x128x128xbf16> to vector<128x128xbf16>
    %49 = arith.index_cast %c1_i32 : i32 to index
    %c0_20 = arith.constant 0 : index
    %c0_21 = arith.constant 0 : index
    %50 = vector.load %arg3[%49, %c0_20, %c0_21] : memref<3x8x128xbf16, #tpu.memory_space<vmem>>, vector<1x8x128xbf16>
    %51 = vector.shape_cast %50 : vector<1x8x128xbf16> to vector<8x128xbf16>
    %52 = arith.index_cast %c1_i32 : i32 to index
    %c0_22 = arith.constant 0 : index
    %c0_23 = arith.constant 0 : index
    %53 = vector.load %arg4[%52, %c0_22, %c0_23] : memref<3x128x256xbf16, #tpu.memory_space<vmem>>, vector<1x128x256xbf16>
    %54 = vector.shape_cast %53 : vector<1x128x256xbf16> to vector<128x256xbf16>
    %55 = arith.index_cast %c1_i32 : i32 to index
    %c0_24 = arith.constant 0 : index
    %c0_25 = arith.constant 0 : index
    %56 = vector.load %arg5[%55, %c0_24, %c0_25] : memref<3x1x256xf32, #tpu.memory_space<vmem>>, vector<1x1x256xf32>
    %57 = vector.shape_cast %56 : vector<1x1x256xf32> to vector<1x256xf32>
    %cst_26 = arith.constant 1.000000e+00 : f32
    %58 = vector.broadcast %cst_26 : f32 to vector<1x128xf32>
    %59 = arith.subf %58, %45 : vector<1x128xf32>
    %60 = vector.broadcast %45 : vector<1x128xf32> to vector<8x128xf32>
    %61 = arith.mulf %39, %60 : vector<8x128xf32>
    %62 = arith.truncf %61 : vector<8x128xf32> to vector<8x128xbf16>
    %cst_27 = arith.constant dense<0.000000e+00> : vector<8x128xf32>
    %63 = tpu.matmul %62, %48, %cst_27 {dimension_numbers = #tpu.dot_dimension_numbers<[1], [0], [0], [1], [0, 0, 1, 1], [], []>} : vector<8x128xbf16>, vector<128x128xbf16>, vector<8x128xf32> -> vector<8x128xf32>
    %64 = arith.extf %51 : vector<8x128xbf16> to vector<8x128xf32>
    %65 = arith.addf %63, %64 : vector<8x128xf32>
    %cst_28 = arith.constant 0.000000e+00 : f32
    %66 = vector.broadcast %cst_28 : f32 to vector<8x128xf32>
    %67 = arith.maximumf %65, %66 : vector<8x128xf32>
    %68 = arith.truncf %67 : vector<8x128xf32> to vector<8x128xbf16>
    %cst_29 = arith.constant dense<0.000000e+00> : vector<8x256xf32>
    %69 = tpu.matmul %68, %54, %cst_29 {dimension_numbers = #tpu.dot_dimension_numbers<[1], [0], [0], [1], [0, 0, 1, 1], [], []>} : vector<8x128xbf16>, vector<128x256xbf16>, vector<8x256xf32> -> vector<8x256xf32>
    %70 = vector.broadcast %57 : vector<1x256xf32> to vector<8x256xf32>
    %71 = arith.addf %69, %70 : vector<8x256xf32>
    %72 = vector.extract_strided_slice %71 {offsets = [0, 0], sizes = [8, 128], strides = [1, 1]} : vector<8x256xf32> to vector<8x128xf32>
    %73 = vector.broadcast %59 : vector<1x128xf32> to vector<8x128xf32>
    %74 = arith.mulf %72, %73 : vector<8x128xf32>
    %75 = vector.extract_strided_slice %71 {offsets = [0, 128], sizes = [8, 128], strides = [1, 1]} : vector<8x256xf32> to vector<8x128xf32>
    %76 = vector.broadcast %59 : vector<1x128xf32> to vector<8x128xf32>
    %77 = arith.mulf %75, %76 : vector<8x128xf32>
    %78 = math.exp %74 : vector<8x128xf32>
    %79 = arith.mulf %39, %78 : vector<8x128xf32>
    %80 = arith.addf %79, %77 : vector<8x128xf32>
    %cst_30 = arith.constant dense<0.000000e+00> : vector<8xf32>
    %81 = vector.multi_reduction <add>, %74, %cst_30 [1] : vector<8x128xf32> to vector<8xf32>
    %82 = vector.shape_cast %81 : vector<8xf32> to vector<8x1xf32>
    %83 = arith.addf %42, %82 : vector<8x1xf32>
    %c2_i32 = arith.constant 2 : i32
    %84 = arith.index_cast %c2_i32 : i32 to index
    %c0_31 = arith.constant 0 : index
    %c0_32 = arith.constant 0 : index
    %85 = vector.load %arg6[%84, %c0_31, %c0_32] : memref<3x1x128xf32, #tpu.memory_space<vmem>>, vector<1x1x128xf32>
    %86 = vector.shape_cast %85 : vector<1x1x128xf32> to vector<1x128xf32>
    %87 = arith.index_cast %c2_i32 : i32 to index
    %c0_33 = arith.constant 0 : index
    %c0_34 = arith.constant 0 : index
    %88 = vector.load %arg2[%87, %c0_33, %c0_34] : memref<3x128x128xbf16, #tpu.memory_space<vmem>>, vector<1x128x128xbf16>
    %89 = vector.shape_cast %88 : vector<1x128x128xbf16> to vector<128x128xbf16>
    %90 = arith.index_cast %c2_i32 : i32 to index
    %c0_35 = arith.constant 0 : index
    %c0_36 = arith.constant 0 : index
    %91 = vector.load %arg3[%90, %c0_35, %c0_36] : memref<3x8x128xbf16, #tpu.memory_space<vmem>>, vector<1x8x128xbf16>
    %92 = vector.shape_cast %91 : vector<1x8x128xbf16> to vector<8x128xbf16>
    %93 = arith.index_cast %c2_i32 : i32 to index
    %c0_37 = arith.constant 0 : index
    %c0_38 = arith.constant 0 : index
    %94 = vector.load %arg4[%93, %c0_37, %c0_38] : memref<3x128x256xbf16, #tpu.memory_space<vmem>>, vector<1x128x256xbf16>
    %95 = vector.shape_cast %94 : vector<1x128x256xbf16> to vector<128x256xbf16>
    %96 = arith.index_cast %c2_i32 : i32 to index
    %c0_39 = arith.constant 0 : index
    %c0_40 = arith.constant 0 : index
    %97 = vector.load %arg5[%96, %c0_39, %c0_40] : memref<3x1x256xf32, #tpu.memory_space<vmem>>, vector<1x1x256xf32>
    %98 = vector.shape_cast %97 : vector<1x1x256xf32> to vector<1x256xf32>
    %cst_41 = arith.constant 1.000000e+00 : f32
    %99 = vector.broadcast %cst_41 : f32 to vector<1x128xf32>
    %100 = arith.subf %99, %86 : vector<1x128xf32>
    %101 = vector.broadcast %86 : vector<1x128xf32> to vector<8x128xf32>
    %102 = arith.mulf %80, %101 : vector<8x128xf32>
    %103 = arith.truncf %102 : vector<8x128xf32> to vector<8x128xbf16>
    %cst_42 = arith.constant dense<0.000000e+00> : vector<8x128xf32>
    %104 = tpu.matmul %103, %89, %cst_42 {dimension_numbers = #tpu.dot_dimension_numbers<[1], [0], [0], [1], [0, 0, 1, 1], [], []>} : vector<8x128xbf16>, vector<128x128xbf16>, vector<8x128xf32> -> vector<8x128xf32>
    %105 = arith.extf %92 : vector<8x128xbf16> to vector<8x128xf32>
    %106 = arith.addf %104, %105 : vector<8x128xf32>
    %cst_43 = arith.constant 0.000000e+00 : f32
    %107 = vector.broadcast %cst_43 : f32 to vector<8x128xf32>
    %108 = arith.maximumf %106, %107 : vector<8x128xf32>
    %109 = arith.truncf %108 : vector<8x128xf32> to vector<8x128xbf16>
    %cst_44 = arith.constant dense<0.000000e+00> : vector<8x256xf32>
    %110 = tpu.matmul %109, %95, %cst_44 {dimension_numbers = #tpu.dot_dimension_numbers<[1], [0], [0], [1], [0, 0, 1, 1], [], []>} : vector<8x128xbf16>, vector<128x256xbf16>, vector<8x256xf32> -> vector<8x256xf32>
    %111 = vector.broadcast %98 : vector<1x256xf32> to vector<8x256xf32>
    %112 = arith.addf %110, %111 : vector<8x256xf32>
    %113 = vector.extract_strided_slice %112 {offsets = [0, 0], sizes = [8, 128], strides = [1, 1]} : vector<8x256xf32> to vector<8x128xf32>
    %114 = vector.broadcast %100 : vector<1x128xf32> to vector<8x128xf32>
    %115 = arith.mulf %113, %114 : vector<8x128xf32>
    %116 = vector.extract_strided_slice %112 {offsets = [0, 128], sizes = [8, 128], strides = [1, 1]} : vector<8x256xf32> to vector<8x128xf32>
    %117 = vector.broadcast %100 : vector<1x128xf32> to vector<8x128xf32>
    %118 = arith.mulf %116, %117 : vector<8x128xf32>
    %119 = math.exp %115 : vector<8x128xf32>
    %120 = arith.mulf %80, %119 : vector<8x128xf32>
    %121 = arith.addf %120, %118 : vector<8x128xf32>
    %cst_45 = arith.constant dense<0.000000e+00> : vector<8xf32>
    %122 = vector.multi_reduction <add>, %115, %cst_45 [1] : vector<8x128xf32> to vector<8xf32>
    %123 = vector.shape_cast %122 : vector<8xf32> to vector<8x1xf32>
    %124 = arith.addf %83, %123 : vector<8x1xf32>
    %c3_i32 = arith.constant 3 : i32
    %c0_46 = arith.constant 0 : index
    %c0_47 = arith.constant 0 : index
    %125 = vector.load %arg7[%c0_46, %c0_47] : memref<8x128xf32, #tpu.memory_space<vmem>>, vector<8x128xf32>
    tpu.vector_store %arg7[%c0_46, %c0_47], %121 {strides = array<i32>} : memref<8x128xf32, #tpu.memory_space<vmem>>, vector<8x128xf32>,
    %c0_48 = arith.constant 0 : index
    %c0_49 = arith.constant 0 : index
    %126 = vector.load %arg8[%c0_48, %c0_49] : memref<8x1xf32, #tpu.memory_space<vmem>>, vector<8x1xf32>
    tpu.vector_store %arg8[%c0_48, %c0_49], %124 {strides = array<i32>} : memref<8x1xf32, #tpu.memory_space<vmem>>, vector<8x1xf32>,
    return
  }
  func.func @transform_0(%arg0: i32) -> (i32, i32) {
    %c0_i32 = arith.constant 0 : i32
    %c0_i32_0 = arith.constant 0 : i32
    %c0_i32_1 = arith.constant 0 : i32
    return %c0_i32, %c0_i32_0 : i32, i32
  }
  func.func @transform_1(%arg0: i32) -> (i32, i32, i32) {
    %c0_i32 = arith.constant 0 : i32
    %c0_i32_0 = arith.constant 0 : i32
    %c0_i32_1 = arith.constant 0 : i32
    %c0_i32_2 = arith.constant 0 : i32
    return %c0_i32, %c0_i32_0, %c0_i32_1 : i32, i32, i32
  }
  func.func @transform_2(%arg0: i32) -> (i32, i32, i32) {
    %c0_i32 = arith.constant 0 : i32
    %c0_i32_0 = arith.constant 0 : i32
    %c0_i32_1 = arith.constant 0 : i32
    %c0_i32_2 = arith.constant 0 : i32
    return %c0_i32, %c0_i32_0, %c0_i32_1 : i32, i32, i32
  }
  func.func @transform_3(%arg0: i32) -> (i32, i32, i32) {
    %c0_i32 = arith.constant 0 : i32
    %c0_i32_0 = arith.constant 0 : i32
    %c0_i32_1 = arith.constant 0 : i32
    %c0_i32_2 = arith.constant 0 : i32
    return %c0_i32, %c0_i32_0, %c0_i32_1 : i32, i32, i32
  }
  func.func @transform_4(%arg0: i32) -> (i32, i32, i32) {
    %c0_i32 = arith.constant 0 : i32
    %c0_i32_0 = arith.constant 0 : i32
    %c0_i32_1 = arith.constant 0 : i32
    %c0_i32_2 = arith.constant 0 : i32
    return %c0_i32, %c0_i32_0, %c0_i32_1 : i32, i32, i32
  }
  func.func @transform_5(%arg0: i32) -> (i32, i32, i32) {
    %c0_i32 = arith.constant 0 : i32
    %c0_i32_0 = arith.constant 0 : i32
    %c0_i32_1 = arith.constant 0 : i32
    %c0_i32_2 = arith.constant 0 : i32
    return %c0_i32, %c0_i32_0, %c0_i32_1 : i32, i32, i32
  }
  func.func @transform_6(%arg0: i32) -> (i32, i32) {
    %c0_i32 = arith.constant 0 : i32
    %c0_i32_0 = arith.constant 0 : i32
    %c0_i32_1 = arith.constant 0 : i32
    return %c0_i32, %c0_i32_0 : i32, i32
  }
  func.func @transform_7(%arg0: i32) -> (i32, i32) {
    %c0_i32 = arith.constant 0 : i32
    %c0_i32_0 = arith.constant 0 : i32
    %c0_i32_1 = arith.constant 0 : i32
    return %c0_i32, %c0_i32_0 : i32, i32
  }
}

</mosaic_0001>

<bundles_post_ra>
// kernel: tpu_custom_call.1
= control target key start
LH: loop header
LB: loop body
LE: loop exit
PB: predicated region body
PF: predicated region fallthrough
CT: control target
= control target key end

     0   :  { %13 = vsyncpa [#allocation3], 0  ;;  %s1568_s0 = inlined_call_operand.hbm [shape: f32[8,128], index: 0, kind: input, shape index: {}]   ;;  %s1569_s1 = inlined_call_operand.hbm [shape: bf16[3,128,128], index: 1, kind: input, shape index: {}]   ;;  %s1570_s2 = inlined_call_operand.hbm [shape: bf16[3,8,128], index: 2, kind: input, shape index: {}]   ;;  %s1571_s3 = inlined_call_operand.hbm [shape: bf16[3,128,256], index: 3, kind: input, shape index: {}]   ;;  %s1572_s4 = inlined_call_operand.vmem [shape: f32[3,1,256], index: 4, kind: input, shape index: {}]   ;;  %s1573_s5 = inlined_call_operand.vmem [shape: f32[3,1,128], index: 5, kind: input, shape index: {}]   ;;  %s1574_s6 = inlined_call_operand.hbm [shape: f32[8,128], index: 6, kind: output, shape index: {0}]   ;;  %s1575_s7 = inlined_call_operand.vmem [shape: f32[8,1], index: 7, kind: output, shape index: {1}]  }
   0x1   :  { %14 = vsyncpa [#allocation6], 0 }
   0x2   :  { %15 = vsyncpa [#allocation9], 0 }
   0x3   :  { %16 = vsyncpa [#allocation4], 0  ;;  %s1356_s24 = smov [#allocation5]   ;;  %s1238_s28 = scalar_lea.hbm %s1569_s1, 3072 }
   0x4   :  { %s32_s25 = sshll.u32 %s1356_s24, 4  ;;  %p1239_p0 = scmp.ne.s32.totalorder %s1569_s1, %s1238_s28  ;;  %s33_s25 = int_to_ptr.vmem [resolvable:$true] %s32_s25 }
   0x5   :  { %p1242_p1 = scmp.lt.u32.totalorder %s1238_s28, %s1569_s1 }
   0x7   :  { %p1244_p2 = pnand %p1242_p1, %p1239_p0 }
   0x9   :  { %1247 = shalt.err (!%p1244_p2)
}
   0xa   :  { %s1248_s10 = scalar_lea.vmem %s33_s25, 3072  ;;  %p1253_p4 = scmp.lt.s32.totalorder %s33_s25, %s33_s25 }
   0xb   :  { %p1249_p3 = scmp.ne.s32.totalorder %s33_s25, %s1248_s10  ;;  %p1254_p5 = scmp.lt.s32.totalorder %s1248_s10, %s1248_s10 }
   0xd   :  { %p1255_p6 = por %p1254_p5, %p1253_p4 }
   0xf   :  { %p1256_p7 = pnand %p1255_p6, %p1249_p3 }
  0x11   :  { %1259 = shalt.err (!%p1256_p7)
}
  0x12   :  { %s1357_s11 = smov 64   ;;  %s1358_s12 = smov 4  }
  0x13   :  { %38 = dma.hbm_to_vmem [thread:$0]  %s1569_s1, 3072, %s33_s25, [#allocation6], %s1357_s11, %s1357_s11, %s1358_s12  }
  0x14   :  { %s1359_s15 = smov [#allocation2]   ;;  %s1360_s17 = smov [#allocation7]  }
  0x15   :  { %s23_s16 = sshll.u32 %s1359_s15, 4  ;;  %s44_s18 = sshll.u32 %s1360_s17, 4  ;;  %s24_s16 = int_to_ptr.vmem [resolvable:$true] %s23_s16  ;;  %s45_s18 = int_to_ptr.vmem [resolvable:$true] %s44_s18 }
  0x16   :  { %s1260_s21 = scalar_lea.hbm %s1568_s0, 128 }
  0x17   :  { %p1261_p8 = scmp.ne.s32.totalorder %s1568_s0, %s1260_s21  ;;  %p1264_p9 = scmp.lt.u32.totalorder %s1260_s21, %s1568_s0 }
  0x19   :  { %p1266_p10 = pnand %p1264_p9, %p1261_p8 }
  0x1b   :  { %1269 = shalt.err (!%p1266_p10)
}
  0x1c   :  { %s1270_s1 = scalar_lea.vmem %s24_s16, 128  ;;  %p1275_p12 = scmp.lt.s32.totalorder %s24_s16, %s24_s16 }
  0x1d   :  { %p1271_p11 = scmp.ne.s32.totalorder %s24_s16, %s1270_s1  ;;  %p1276_p13 = scmp.lt.s32.totalorder %s1270_s1, %s1270_s1 }
  0x1f   :  { %p1277_p0 = por %p1276_p13, %p1275_p12 }
  0x21   :  { %p1278_p1 = pnand %p1277_p0, %p1271_p11 }
  0x23   :  { %1281 = shalt.err (!%p1278_p1)
}
  0x24   :  { %26 = dma.hbm_to_vmem [thread:$0]  %s1568_s0, 128, %s24_s16, [#allocation3]  }
  0x25   :  { %s1282_s30 = scalar_lea.hbm %s1570_s2, 192 }
  0x26   :  { %p1283_p2 = scmp.ne.s32.totalorder %s1570_s2, %s1282_s30  ;;  %p1286_p3 = scmp.lt.u32.totalorder %s1282_s30, %s1570_s2 }
  0x28   :  { %p1288_p4 = pnand %p1286_p3, %p1283_p2 }
  0x2a   :  { %1291 = shalt.err (!%p1288_p4)
}
  0x2b   :  { %s1292_s14 = scalar_lea.vmem %s45_s18, 192  ;;  %p1297_p6 = scmp.lt.s32.totalorder %s45_s18, %s45_s18 }
  0x2c   :  { %p1293_p5 = scmp.ne.s32.totalorder %s45_s18, %s1292_s14  ;;  %p1298_p7 = scmp.lt.s32.totalorder %s1292_s14, %s1292_s14 }
  0x2e   :  { %p1299_p8 = por %p1298_p7, %p1297_p6 }
  0x30   :  { %p1300_p9 = pnand %p1299_p8, %p1293_p5 }
  0x32   :  { %1303 = shalt.err (!%p1300_p9)
}
  0x33   :  { %50 = dma.hbm_to_vmem [thread:$0]  %s1570_s2, 192, %s45_s18, [#allocation6], %s1357_s11, %s1357_s11, %s1358_s12  }
  0x34   :  { %s1361_s16 = smov [#allocation8]   ;;  %s1304_s21 = scalar_lea.hbm %s1571_s3, 6144 }
  0x35   :  { %s56_s17 = sshll.u32 %s1361_s16, 4  ;;  %p1305_p10 = scmp.ne.s32.totalorder %s1571_s3, %s1304_s21  ;;  %s57_s17 = int_to_ptr.vmem [resolvable:$true] %s56_s17 }
  0x36   :  { %p1308_p11 = scmp.lt.u32.totalorder %s1304_s21, %s1571_s3 }
  0x38   :  { %p1310_p12 = pnand %p1308_p11, %p1305_p10 }
  0x3a   :  { %1313 = shalt.err (!%p1310_p12)
}
  0x3b   :  { %s1314_s1 = scalar_lea.vmem %s57_s17, 6144  ;;  %p1319_p0 = scmp.lt.s32.totalorder %s57_s17, %s57_s17 }
  0x3c   :  { %p1315_p13 = scmp.ne.s32.totalorder %s57_s17, %s1314_s1  ;;  %p1320_p1 = scmp.lt.s32.totalorder %s1314_s1, %s1314_s1 }
  0x3e   :  { %p1321_p2 = por %p1320_p1, %p1319_p0 }
  0x40   :  { %p1322_p3 = pnand %p1321_p2, %p1315_p13 }
  0x42   :  { %1325 = shalt.err (!%p1322_p3)
}
  0x43   :  { %s1362_s2 = smov 128   ;;  %s1363_s11 = smov 8  }
  0x44   :  { %62 = dma.hbm_to_vmem [thread:$0]  %s1571_s3, 6144, %s57_s17, [#allocation9], %s1362_s2, %s1362_s2, %s1363_s11  }
  0x45   :  { %1348 = dma.done.wait [#allocation3], 128  }
  0x46   :  { %1349 = vsyncadd [#allocation3], 4294967168 }
  0x47   :  { %1350 = dma.done.wait [#allocation6], 3264  }
  0x48   :  { %1351 = vsyncadd [#allocation6], 4294964032 }
  0x49   :  { %1352 = dma.done.wait [#allocation9], 6144  }
  0x4a   :  { %1353 = vsyncadd [#allocation9], 4294961152  ;;  %v1364_v0 = vmov 0.0   ;;  %vm1365_vm0 = vmmov 0   ;;  %v1136_v1 = vld [vmem:[#allocation5] sm:$0xff]   ;;  %v1137_v2 = vld [vmem:[#allocation5 + $0x8] sm:$0xff]   ;;  %v118_v5 = vlaneseq }
  0x4b   :  { %1064 = vmatprep.subr.bf16.mxu0 %v1364_v0  ;;  %1080 = vmatprep.mubr.msk.bf16.mxu0 %vm1365_vm0, %v1364_v0  ;;  %v1138_v3 = vld [vmem:[#allocation5 + $0x10] sm:$0xff]   ;;  %v1139_v4 = vld [vmem:[#allocation5 + $0x18] sm:$0xff]   ;;  %v1147_v8 = vld [vmem:[#allocation8 + $0x14] ss:$8 sps:$4 sm:$0xff]   ;;  %v1366_v33 = vmov 0  }
  0x4c   :  { %1065 = vmatpush3.bf16.msra.mxu0 %v1136_v1  ;;  %v1144_v6 = vld [vmem:[#allocation8 + $0x4] ss:$8 sps:$4 sm:$0xff]   ;;  %v1146_v7 = vld [vmem:[#allocation8] ss:$8 sps:$4 sm:$0xff]   ;;  %v1149_v9 = vld [vmem:[#allocation8 + $0x10] ss:$8 sps:$4 sm:$0xff]   ;;  %339 = vmatprep.mubr.bf16.mxu1 %v1366_v33 }
  0x4d   :  { %1066 = vmatprep.subr.bf16.mxu0 %v1364_v0  ;;  %307 = vmatprep.subr.bf16.mxu1 %v1144_v6  ;;  %v1468_v10 = vshrl.u32 %v118_v5, 7  ;;  %v1150_v11 = vld [vmem:[#allocation8 + $0x24] ss:$8 sps:$4 sm:$0xff]   ;;  %v1140_v12 = vld [vmem:[#allocation5 + $0x20] sm:$0xff]   ;;  %v1141_v13 = vld [vmem:[#allocation5 + $0x28] sm:$0xff]  }
  0x4e   :  { %308 = vmatpush1.bf16.msra.mxu1 %v1146_v7  ;;  %v1152_v14 = vld [vmem:[#allocation8 + $0x20] ss:$8 sps:$4 sm:$0xff]   ;;  %v1474_v15 = vld [vmem:[%s1573_s5] sm:$0x1]  ;;  %v1153_v17 = vld [vmem:[#allocation8 + $0x34] ss:$8 sps:$4 sm:$0xff]  }
  0x4f   :  { %309 = vmatprep.subr.bf16.mxu1 %v1147_v8  ;;  %v1477_v16 = vsub.s32 0, %v1468_v10  ;;  %v1155_v18 = vld [vmem:[#allocation8 + $0x30] ss:$8 sps:$4 sm:$0xff]   ;;  %v1156_v19 = vld [vmem:[#allocation8 + $0x44] ss:$8 sps:$4 sm:$0xff]   ;;  %v1169_v35 = vld [vmem:[#allocation5 + $0x48] sm:$0xff]  }
  0x50   :  { %1067 = vmatpush3.bf16.msra.mxu0 %v1137_v2  ;;  %v1142_v20 = vld [vmem:[#allocation5 + $0x30] sm:$0xff]   ;;  %v1480_v21 = vld [vmem:[#allocation2] sm:$0xff]  ;;  %v1159_v24 = vld [vmem:[#allocation8 + $0x54] ss:$8 sps:$4 sm:$0xff]   ;;  %v116_v52 = vsub.f32 1.0, %v1474_v15  ;;  %v1510_v62 = vsub.s32 1, %v1468_v10 }
  0x51   :  { %1068 = vmatprep.subr.bf16.mxu0 %v1364_v0  ;;  %v121_v22 = vrot.slane %v1474_v15, %v1477_v16  ;;  %v1158_v23 = vld [vmem:[#allocation8 + $0x40] ss:$8 sps:$4 sm:$0xff]   ;;  %v1143_v25 = vld [vmem:[#allocation5 + $0x38] sm:$0xff]   ;;  %v1165_v31 = vld [vmem:[#allocation8 + $0x74] ss:$8 sps:$4 sm:$0xff]  }
  0x52   :  { %310 = vmatpush1.bf16.msra.mxu1 %v1149_v9  ;;  %v1161_v27 = vld [vmem:[#allocation8 + $0x50] ss:$8 sps:$4 sm:$0xff]   ;;  %v1162_v28 = vld [vmem:[#allocation8 + $0x64] ss:$8 sps:$4 sm:$0xff]   ;;  %v1164_v30 = vld [vmem:[#allocation8 + $0x60] ss:$8 sps:$4 sm:$0xff]   ;;  %v352_v54 = vrot.slane %v116_v52, %v1477_v16 }
  0x53   :  { %311 = vmatprep.subr.bf16.mxu1 %v1150_v11  ;;  %v123_v26 = vmul.f32 %v121_v22, %v1480_v21  ;;  %v1167_v32 = vld [vmem:[#allocation8 + $0x70] ss:$8 sps:$4 sm:$0xff]   ;;  %v1170_v45 = vld [vmem:[#allocation5 + $0x50] sm:$0xff]   ;;  %v1173_v48 = vld [vmem:[#allocation5 + $0x68] sm:$0xff]  }
  0x54   :  { %1069 = vmatpush3.bf16.msra.mxu0 %v1138_v3  ;;  %v1168_v34 = vld [vmem:[#allocation5 + $0x40] sm:$0xff]   ;;  %v1171_v46 = vld [vmem:[#allocation5 + $0x58] sm:$0xff]   ;;  %v1174_v49 = vld [vmem:[#allocation5 + $0x70] sm:$0xff]  }
  0x55   :  { %1070 = vmatprep.subr.bf16.mxu0 %v1364_v0  ;;  %v124_v29 = vpack.c.bf16 %v123_v26, %v123_v26  ;;  %v1493_v36 = vld [vmem:[#allocation7] sm:$0xff]   ;;  %v1175_v50 = vld [vmem:[#allocation5 + $0x78] sm:$0xff]   ;;  %v1176_v7 = vld [vmem:[#allocation8 + $0x80] ss:$8 sps:$4 sm:$0xff]  }
  0x56   :  { %312 = vmatpush1.bf16.msra.mxu1 %v1152_v14  ;;  %v125_v37 = vunpack.c.l.bf16 %v1493_v36  ;;  %v1172_v47 = vld [vmem:[#allocation5 + $0x60] sm:$0xff]   ;;  %v115_v51 = vld [vmem:[%s1572_s4] sm:$0x3]  ;;  %v1182_v15 = vld [vmem:[#allocation8 + $0xa0] ss:$8 sps:$4 sm:$0xff]  }
  0x57   :  { %313 = vmatprep.subr.bf16.mxu1 %v1153_v17  ;;  %v220_v53 = vrot.slane %v115_v51, %v1477_v16  ;;  %v224_v63 = vrot.slane %v115_v51, %v1510_v62  ;;  %v1516_v2 = vld [vmem:[%s1573_s5 + $0x1] sm:$0x1]  ;;  %v1181_v9 = vld [vmem:[#allocation8 + $0x94] ss:$8 sps:$4 sm:$0xff]   ;;  %v1179_v11 = vld [vmem:[#allocation8 + $0x90] ss:$8 sps:$4 sm:$0xff]  }
  0x58   :  { %1071 = vmatpush3.bf16.msra.mxu0 %v1139_v4  ;;  %v408_v6 = vrot.slane %v1516_v2, %v1477_v16  ;;  %v1178_v8 = vld [vmem:[#allocation8 + $0x84] ss:$8 sps:$4 sm:$0xff]   ;;  %v1187_v17 = vld [vmem:[#allocation8 + $0xb4] ss:$8 sps:$4 sm:$0xff]   ;;  %v1191_v22 = vld [vmem:[#allocation8 + $0xd0] ss:$8 sps:$4 sm:$0xff]  }
  0x59   :  { %1072 = vmatprep.subr.bf16.mxu0 %v1364_v0  ;;  %v1197_v26 = vld [vmem:[#allocation8 + $0xf0] ss:$8 sps:$4 sm:$0xff]  }
  0x5a   :  { %314 = vmatpush1.bf16.msra.mxu1 %v1155_v18  ;;  %v1185_v18 = vld [vmem:[#allocation8 + $0xb0] ss:$8 sps:$4 sm:$0xff]  }
  0x5b   :  { %315 = vmatprep.subr.bf16.mxu1 %v1156_v19  ;;  %v1190_v19 = vld [vmem:[#allocation8 + $0xc4] ss:$8 sps:$4 sm:$0xff]  }
  0x5c   :  { %1073 = vmatpush3.bf16.msra.mxu0 %v1140_v12 }
  0x5d   :  { %1074 = vmatprep.subr.bf16.mxu0 %v1364_v0 }
  0x5e   :  { %316 = vmatpush1.bf16.msra.mxu1 %v1158_v23  ;;  %v1196_v23 = vld [vmem:[#allocation8 + $0xe4] ss:$8 sps:$4 sm:$0xff]  }
  0x5f   :  { %317 = vmatprep.subr.bf16.mxu1 %v1159_v24  ;;  %v1194_v24 = vld [vmem:[#allocation8 + $0xe0] ss:$8 sps:$4 sm:$0xff]  }
  0x60   :  { %1075 = vmatpush3.bf16.msra.mxu0 %v1141_v13  ;;  %v1184_v13 = vld [vmem:[#allocation8 + $0xa4] ss:$8 sps:$4 sm:$0xff]  }
  0x61   :  { %1076 = vmatprep.subr.bf16.mxu0 %v1364_v0 }
  0x62   :  { %318 = vmatpush1.bf16.msra.mxu1 %v1161_v27  ;;  %v1200_v27 = vld [vmem:[#allocation5 + $0x80] sm:$0xff]  }
  0x63   :  { %319 = vmatprep.subr.bf16.mxu1 %v1162_v28  ;;  %v1201_v28 = vld [vmem:[#allocation5 + $0x88] sm:$0xff]  }
  0x64   :  { %1077 = vmatpush3.bf16.msra.mxu0 %v1142_v20  ;;  %v1188_v20 = vld [vmem:[#allocation8 + $0xc0] ss:$8 sps:$4 sm:$0xff]  }
  0x65   :  { %1078 = vmatprep.subr.bf16.mxu0 %v1364_v0 }
  0x66   :  { %320 = vmatpush1.bf16.msra.mxu1 %v1164_v30 }
  0x67   :  { %321 = vmatprep.subr.bf16.mxu1 %v1165_v31 }
  0x68   :  { %1079 = vmatpush3.bf16.msra.mxu0 %v1143_v25  ;;  %v1199_v25 = vld [vmem:[#allocation8 + $0xf4] ss:$8 sps:$4 sm:$0xff]  }
  0x69   :  { %1084 = vmatprep.subr.bf16.mxu0 %v1364_v0 }
  0x6a   :  { %322 = vmatpush1.bf16.msra.mxu1 %v1167_v32 }
  0x6b   :  { %1081 = vmatmul.mubr.bf16.vlgmr.msra.gmra.mrb[0].mxu0 %v124_v29  ;;  %594 = vmatprep.subr.bf16.mxu1 %v1178_v8  ;;  %v412_v29 = vunpack.c.h.bf16 %v1493_v36  ;;  %v1205_v36 = vld [vmem:[#allocation5 + $0xa8] sm:$0xff]   ;;  %v1217_v8 = vld [vmem:[#allocation8 + $0x130] ss:$8 sps:$4 sm:$0xff]  }
  0x6c   :  { %1100 = vmatprep.mubr.msk.bf16.mxu0 %vm1365_vm0, %v1364_v0  ;;  %1085 = vmatpush3.bf16.msra.mxu0 %v1168_v34 }
  0x6d   :  { %1086 = vmatprep.subr.bf16.mxu0 %v1364_v0 }
  0x70   :  { %1087 = vmatpush3.bf16.msra.mxu0 %v1169_v35 }
  0x71   :  { %1088 = vmatprep.subr.bf16.mxu0 %v1364_v0 }
  0x74   :  { %1089 = vmatpush3.bf16.msra.mxu0 %v1170_v45 }
  0x75   :  { %1090 = vmatprep.subr.bf16.mxu0 %v1364_v0 }
  0x78   :  { %1091 = vmatpush3.bf16.msra.mxu0 %v1171_v46 }
  0x79   :  { %1092 = vmatprep.subr.bf16.mxu0 %v1364_v0 }
  0x7c   :  { %1093 = vmatpush3.bf16.msra.mxu0 %v1172_v47 }
  0x7d   :  { %1094 = vmatprep.subr.bf16.mxu0 %v1364_v0 }
  0x80   :  { %1095 = vmatpush3.bf16.msra.mxu0 %v1173_v48 }
  0x81   :  { %1096 = vmatprep.subr.bf16.mxu0 %v1364_v0 }
  0x84   :  { %1097 = vmatpush3.bf16.msra.mxu0 %v1174_v49 }
  0x85   :  { %1098 = vmatprep.subr.bf16.mxu0 %v1364_v0 }
  0x88   :  { %1099 = vmatpush3.bf16.msra.mxu0 %v1175_v50 }
  0x89   :  { %1104 = vmatprep.subr.bf16.mxu0 %v1364_v0 }
 0x13e   :  { %v208_v38 = vpop.f32.mrb[0].mxu0 }
 0x13f   :  { %v209_v39 = vadd.f32 %v208_v38, %v125_v37  ;;  %v1082_v40 = vpop.f32.mrb[1].mxu0 }
 0x140   :  { %v211_v41 = vpop.f32.mrb[2].mxu0  ;;  %v1203_v40 = vld [vmem:[#allocation5 + $0x98] sm:$0xff]  }
 0x141   :  { %v214_v42 = vmax.f32 %v209_v39, 0.0  ;;  %v1083_v43 = vpop.f32.mrb[3].mxu0  ;;  %v1202_v39 = vld [vmem:[#allocation5 + $0x90] sm:$0xff]   ;;  %v1204_v41 = vld [vmem:[#allocation5 + $0xa0] sm:$0xff]  }
 0x142   :  { %v1207_v43 = vld [vmem:[#allocation5 + $0xb8] sm:$0xff]  }
 0x143   :  { %v215_v44 = vpack.c.bf16 %v214_v42, %v214_v42  ;;  %v1206_v42 = vld [vmem:[#allocation5 + $0xb0] sm:$0xff]  }
 0x145   :  { %340 = vmatmul.mubr.bf16.vlgmr.msra.gmra.mrb[0].mxu1 %v215_v44  ;;  %v403_v44 = vsub.f32 1.0, %v1516_v2 }
 0x146   :  { %626 = vmatprep.mubr.bf16.mxu1 %v1366_v33  ;;  %595 = vmatpush1.bf16.msra.mxu1 %v1176_v7  ;;  %v1219_v7 = vld [vmem:[#allocation8 + $0x134] ss:$8 sps:$4 sm:$0xff]  }
 0x147   :  { %596 = vmatprep.subr.bf16.mxu1 %v1181_v9  ;;  %v639_v46 = vrot.slane %v403_v44, %v1477_v16  ;;  %v1222_v9 = vld [vmem:[#allocation8 + $0x144] ss:$8 sps:$4 sm:$0xff]  }
 0x14a   :  { %597 = vmatpush1.bf16.msra.mxu1 %v1179_v11  ;;  %v1225_v11 = vld [vmem:[#allocation8 + $0x154] ss:$8 sps:$4 sm:$0xff]  }
 0x14b   :  { %598 = vmatprep.subr.bf16.mxu1 %v1184_v13  ;;  %v1228_v13 = vld [vmem:[#allocation8 + $0x164] ss:$8 sps:$4 sm:$0xff]  }
 0x14e   :  { %599 = vmatpush1.bf16.msra.mxu1 %v1182_v15  ;;  %v1231_v15 = vld [vmem:[#allocation8 + $0x174] ss:$8 sps:$4 sm:$0xff]  }
 0x14f   :  { %600 = vmatprep.subr.bf16.mxu1 %v1187_v17  ;;  %v1229_v17 = vld [vmem:[#allocation8 + $0x170] ss:$8 sps:$4 sm:$0xff]  }
 0x152   :  { %601 = vmatpush1.bf16.msra.mxu1 %v1185_v18  ;;  %v670_v18 = vld [vmem:[#allocation7 + $0x8] sm:$0xf] }
 0x153   :  { %602 = vmatprep.subr.bf16.mxu1 %v1190_v19  ;;  %v699_v19 = vunpack.c.l.bf16 %v670_v18 }
 0x156   :  { %603 = vmatpush1.bf16.msra.mxu1 %v1188_v20 }
 0x218   :  { %v341_v55 = vpop.f32.mrb[0].mxu1 }
 0x219   :  { %v342_v56 = vadd.f32 %v341_v55, %v220_v53  ;;  %v343_v57 = vpop.f32.mrb[1].mxu1  ;;  %v1011_v55 = vld [vmem:[%s1573_s5 + $0x2] sm:$0x1] }
 0x21a   :  { %v345_v58 = vpop.f32.mrb[2].mxu1  ;;  %v344_v1 = vadd.f32 %v343_v57, %v224_v63 }
 0x21b   :  { %v346_v59 = vpop.f32.mrb[3].mxu1  ;;  %v354_v60 = vmul.f32 %v352_v54, %v342_v56 }
 0x21c   :  { %v355_v4 = vmul.f32 %v352_v54, %v344_v1  ;;  %v695_v59 = vrot.slane %v1011_v55, %v1477_v16  ;;  %v1213_v1 = vld [vmem:[#allocation8 + $0x114] ss:$8 sps:$4 sm:$0xff]  }
 0x21d   :  { %360 = vadd.xlane.f32.xlu0 %v354_v60  ;;  %v356_v61 = vmul.f32 1.442695, %v354_v60  ;;  %v1208_v60 = vld [vmem:[#allocation8 + $0x100] ss:$8 sps:$4 sm:$0xff]  }
 0x21f   :  { %1232 = vpow2.f32 %v356_v61  ;;  %v1210_v61 = vld [vmem:[#allocation8 + $0x104] ss:$8 sps:$4 sm:$0xff]  }
 0x229   :  { %v1233_v3 = vpop.eup %1232 }
 0x22a   :  { %v358_v5 = vmul.f32 %v1233_v3, %v1480_v21  ;;  %v1193_v21 = vld [vmem:[#allocation8 + $0xd4] ss:$8 sps:$4 sm:$0xff]   ;;  %v1211_v3 = vld [vmem:[#allocation8 + $0x110] ss:$8 sps:$4 sm:$0xff]  }
 0x22b   :  { %604 = vmatprep.subr.bf16.mxu1 %v1193_v21 }
 0x22c   :  { %v1521_v10 = vadd.f32 %v358_v5, %v355_v4  ;;  %605 = vmatpush1.bf16.msra.mxu1 %v1191_v22  ;;  %v1216_v4 = vld [vmem:[#allocation8 + $0x124] ss:$8 sps:$4 sm:$0xff]  }
 0x22d   :  { %606 = vmatprep.subr.bf16.mxu1 %v1196_v23 }
 0x22e   :  { %v410_v12 = vmul.f32 %v408_v6, %v1521_v10  ;;  %v1214_v6 = vld [vmem:[#allocation8 + $0x120] ss:$8 sps:$4 sm:$0xff]  }
 0x230   :  { %v411_v14 = vpack.c.bf16 %v410_v12, %v410_v12  ;;  %607 = vmatpush1.bf16.msra.mxu1 %v1194_v24  ;;  %v1223_v12 = vld [vmem:[#allocation8 + $0x150] ss:$8 sps:$4 sm:$0xff]  }
 0x231   :  { %608 = vmatprep.subr.bf16.mxu1 %v1199_v25 }
 0x232   :  { %1101 = vmatmul.mubr.bf16.vlgmr.msra.gmra.mrb[4].mxu0 %v411_v14  ;;  %v1226_v14 = vld [vmem:[#allocation8 + $0x160] ss:$8 sps:$4 sm:$0xff]  }
 0x233   :  { %1120 = vmatprep.mubr.msk.bf16.mxu0 %vm1365_vm0, %v1364_v0  ;;  %1105 = vmatpush3.bf16.msra.mxu0 %v1200_v27  ;;  %v1012_v27 = vld [vmem:[%s1572_s4 + $0x4] sm:$0x3] }
 0x234   :  { %609 = vmatpush1.bf16.msra.mxu1 %v1197_v26  ;;  %1106 = vmatprep.subr.bf16.mxu0 %v1364_v0 }
 0x235   :  { %881 = vmatprep.subr.bf16.mxu1 %v1210_v61 }
 0x237   :  { %1107 = vmatpush3.bf16.msra.mxu0 %v1201_v28  ;;  %v690_v28 = vsub.f32 1.0, %v1011_v55 }
 0x238   :  { %1108 = vmatprep.subr.bf16.mxu0 %v1364_v0 }
 0x23b   :  { %1109 = vmatpush3.bf16.msra.mxu0 %v1202_v39 }
 0x23c   :  { %1110 = vmatprep.subr.bf16.mxu0 %v1364_v0 }
 0x23f   :  { %1111 = vmatpush3.bf16.msra.mxu0 %v1203_v40  ;;  %v798_v40 = vrot.slane %v1012_v27, %v1510_v62 }
 0x240   :  { %1112 = vmatprep.subr.bf16.mxu0 %v1364_v0 }
 0x243   :  { %1113 = vmatpush3.bf16.msra.mxu0 %v1204_v41 }
 0x244   :  { %1114 = vmatprep.subr.bf16.mxu0 %v1364_v0 }
 0x247   :  { %1115 = vmatpush3.bf16.msra.mxu0 %v1205_v36 }
 0x248   :  { %1116 = vmatprep.subr.bf16.mxu0 %v1364_v0 }
 0x24b   :  { %1117 = vmatpush3.bf16.msra.mxu0 %v1206_v42 }
 0x24c   :  { %1118 = vmatprep.subr.bf16.mxu0 %v1364_v0 }
 0x24f   :  { %1119 = vmatpush3.bf16.msra.mxu0 %v1207_v43 }
 0x305   :  { %v495_v30 = vpop.f32.mrb[4].mxu0 }
 0x306   :  { %v496_v31 = vadd.f32 %v495_v30, %v412_v29  ;;  %v1102_v32 = vpop.f32.mrb[5].mxu0  ;;  %v794_v29 = vrot.slane %v1012_v27, %v1477_v16  ;;  %v926_v30 = vrot.slane %v690_v28, %v1477_v16 }
 0x307   :  { %v498_v34 = vpop.f32.mrb[6].mxu0 }
 0x308   :  { %v501_v35 = vmax.f32 %v496_v31, 0.0  ;;  %v1103_v37 = vpop.f32.mrb[7].mxu0 }
 0x30a   :  { %v502_v38 = vpack.c.bf16 %v501_v35, %v501_v35 }
 0x30c   :  { %627 = vmatmul.mubr.bf16.vlgmr.msra.gmra.mrb[4].mxu1 %v502_v38 }
 0x30d   :  { %913 = vmatprep.mubr.bf16.mxu1 %v1366_v33  ;;  %v986_v33 = vld [vmem:[%s1572_s4 + $0x2] sm:$0x3]  ;;  %882 = vmatpush1.bf16.msra.mxu1 %v1208_v60  ;;  %s1367_s4 = smov [#allocation10]  }
 0x30e   :  { %v507_v45 = vrot.slane %v986_v33, %v1477_v16  ;;  %v511_v0 = vrot.slane %v986_v33, %v1510_v62  ;;  %883 = vmatprep.subr.bf16.mxu1 %v1213_v1  ;;  %s946_s0 = sshll.u32 %s1367_s4, 4  ;;  %s947_s0 = int_to_ptr.vmem [resolvable:$true] %s946_s0 }
 0x30f   :  { %s1326_s15 = scalar_lea.vmem %s947_s0, 128  ;;  %p1331_p5 = scmp.lt.s32.totalorder %s947_s0, %s947_s0 }
 0x310   :  { %p1327_p4 = scmp.ne.s32.totalorder %s947_s0, %s1326_s15  ;;  %p1332_p6 = scmp.lt.s32.totalorder %s1326_s15, %s1326_s15 }
 0x311   :  { %884 = vmatpush1.bf16.msra.mxu1 %v1211_v3 }
 0x312   :  { %885 = vmatprep.subr.bf16.mxu1 %v1216_v4  ;;  %p1333_p7 = por %p1332_p6, %p1331_p5 }
 0x314   :  { %p1334_p8 = pnand %p1333_p7, %p1327_p4 }
 0x315   :  { %886 = vmatpush1.bf16.msra.mxu1 %v1214_v6 }
 0x316   :  { %887 = vmatprep.subr.bf16.mxu1 %v1219_v7 }
 0x319   :  { %888 = vmatpush1.bf16.msra.mxu1 %v1217_v8 }
 0x31a   :  { %889 = vmatprep.subr.bf16.mxu1 %v1222_v9 }
 0x3df   :  { %v628_v47 = vpop.f32.mrb[4].mxu1 }
 0x3e0   :  { %v629_v48 = vadd.f32 %v628_v47, %v507_v45  ;;  %v630_v49 = vpop.f32.mrb[5].mxu1 }
 0x3e1   :  { %v632_v50 = vpop.f32.mrb[6].mxu1  ;;  %v631_v54 = vadd.f32 %v630_v49, %v511_v0 }
 0x3e2   :  { %v633_v51 = vpop.f32.mrb[7].mxu1  ;;  %v641_v52 = vmul.f32 %v639_v46, %v629_v48 }
 0x3e3   :  { %v642_v57 = vmul.f32 %v639_v46, %v631_v54 }
 0x3e4   :  { %647 = vadd.xlane.f32.xlu0 %v641_v52  ;;  %v643_v53 = vmul.f32 1.442695, %v641_v52 }
 0x3e6   :  { %1234 = vpow2.f32 %v643_v53 }
 0x3f0   :  { %v1235_v56 = vpop.eup %1234 }
 0x3f1   :  { %v645_v58 = vmul.f32 %v1235_v56, %v1521_v10  ;;  %v1220_v10 = vld [vmem:[#allocation8 + $0x140] ss:$8 sps:$4 sm:$0xff]  }
 0x3f2   :  { %890 = vmatpush1.bf16.msra.mxu1 %v1220_v10 }
 0x3f3   :  { %v646_v63 = vadd.f32 %v645_v58, %v642_v57  ;;  %891 = vmatprep.subr.bf16.mxu1 %v1225_v11 }
 0x3f5   :  { %v697_v2 = vmul.f32 %v695_v59, %v646_v63 }
 0x3f6   :  { %892 = vmatpush1.bf16.msra.mxu1 %v1223_v12 }
 0x3f7   :  { %v698_v5 = vpack.c.bf16 %v697_v2, %v697_v2  ;;  %893 = vmatprep.subr.bf16.mxu1 %v1228_v13 }
 0x3f9   :  { %1121 = vmatmul.mubr.bf16.vlgmr.msra.gmra.mrb[8].mxu0 %v698_v5 }
 0x3fa   :  { %894 = vmatpush1.bf16.msra.mxu1 %v1226_v14 }
 0x3fb   :  { %895 = vmatprep.subr.bf16.mxu1 %v1231_v15 }
 0x3fe   :  { %896 = vmatpush1.bf16.msra.mxu1 %v1229_v17 }
 0x4cc   :  { %v782_v20 = vpop.f32.mrb[8].mxu0 }
 0x4cd   :  { %v783_v21 = vadd.f32 %v782_v20, %v699_v19  ;;  %v1122_v22 = vpop.f32.mrb[9].mxu0 }
 0x4ce   :  { %v785_v23 = vpop.f32.mrb[10].mxu0 }
 0x4cf   :  { %v788_v24 = vmax.f32 %v783_v21, 0.0  ;;  %v1123_v25 = vpop.f32.mrb[11].mxu0 }
 0x4d1   :  { %v789_v26 = vpack.c.bf16 %v788_v24, %v788_v24 }
 0x4d3   :  { %914 = vmatmul.mubr.bf16.vlgmr.msra.gmra.mrb[8].mxu1 %v789_v26 }
 0x5a6   :  { %v915_v31 = vpop.f32.mrb[8].mxu1 }
 0x5a7   :  { %v916_v32 = vadd.f32 %v915_v31, %v794_v29  ;;  %v917_v34 = vpop.f32.mrb[9].mxu1 }
 0x5a8   :  { %v919_v35 = vpop.f32.mrb[10].mxu1  ;;  %v918_v41 = vadd.f32 %v917_v34, %v798_v40 }
 0x5a9   :  { %v920_v37 = vpop.f32.mrb[11].mxu1  ;;  %v928_v38 = vmul.f32 %v926_v30, %v916_v32 }
 0x5aa   :  { %v929_v42 = vmul.f32 %v926_v30, %v918_v41 }
 0x5ab   :  { %934 = vadd.xlane.f32.xlu1 %v928_v38  ;;  %v930_v39 = vmul.f32 1.442695, %v928_v38 }
 0x5ad   :  { %1236 = vpow2.f32 %v930_v39 }
 0x5b7   :  { %v1237_v36 = vpop.eup %1236 }
 0x5b8   :  { %v932_v43 = vmul.f32 %v1237_v36, %v646_v63 }
 0x5ba   :  { %v933_v33 = vadd.f32 %v932_v43, %v929_v42 }
 0x5bc   :  { %937 = vst [vmem:[#allocation10] sm:$0xff] %v933_v33 }
 0x5bd   :  { %1337 = shalt.err (!%p1334_p8)
}
 0x5be   :  { %s1338_s19 = scalar_lea.hbm %s1574_s6, 128 }
 0x5bf   :  { %p1339_p9 = scmp.ne.s32.totalorder %s1574_s6, %s1338_s19  ;;  %p1342_p10 = scmp.lt.u32.totalorder %s1338_s19, %s1574_s6 }
 0x5c1   :  { %p1344_p11 = pnand %p1342_p10, %p1339_p9 }
 0x5c3   :  { %1347 = shalt.err (!%p1344_p11)
}
 0x5c4   :  { %949 = dma.vmem_to_hbm [thread:$0]  %s947_s0, 128, %s1574_s6, [#allocation4]   ;;  %v361_v16 = vpop.xlane.xlu0 %360  ;;  %vm938_vm1 = vcmask 7168  }
 0x5c8   :  { %v648_v62 = vpop.xlane.xlu0 %647 }
 0x5c9   :  { %v649_v44 = vadd.f32 %v648_v62, %v361_v16 }
 0x638   :  { %v935_v45 = vpop.xlane.xlu1 %934 }
 0x639   :  { %v936_v46 = vadd.f32 %v935_v45, %v649_v44 }
 0x63b   :  { %939 = vst.msk [vmem:[%s1575_s7] sm:$0xff] %vm938_vm1, %v936_v46 }
 0x63c   :  { %1354 = dma.done.wait [#allocation4], 128  }
 0x63d   :  { %1355 = vsyncadd [#allocation4], 4294967168 }
 0x63e   :  { %957 = vsyncpa [#allocation3], 1 }
 0x63f   :  { %958 = vsyncpa [#allocation6], 1 }
 0x640   :  { %959 = vsyncpa [#allocation9], 1 }
 0x641   :  { %960 = vsyncpa [#allocation4], 1 }

</bundles_post_ra>
